<compile_context>
chip_gen: v7x
topology: tpu7x:2x2x1
jax: 0.10.0
libtpu: 0.0.40
codegen_flags: <defaults>
</compile_context>

<pallas_src>
import jax
import jax.numpy as jnp
from jax.experimental import pallas as pl
from jax.experimental.pallas import tpu as pltpu


def _ffcoref_kernel(x_ref, w1t_ref, b1w2_ref, b2_ref, o_ref):
    # x_ref:    [F, TN]  candidate feature vectors, batch on lanes
    # w1t_ref:  [H, F]   first-layer weights, transposed
    # b1w2_ref: [H, 2]   column 0 = b1, column 1 = w2 (packed small operands)
    # b2_ref:   [1, 1]   second-layer bias (SMEM scalar)
    # o_ref:    [1, TN]  scores, lane-dense
    n_feats = x_ref.shape[0]  # static

    # Layer 1: h[h, n] = sum_f W1[f, h] * x[f, n] + b1[h]
    # K = F is tiny -> unrolled VPU broadcast-FMA; operands read per-f straight
    # from the refs (load slot is otherwise idle) instead of slicing a big value.
    acc = b1w2_ref[:, 0:1] + w1t_ref[:, 0:1] * x_ref[pl.ds(0, 1), :]   # [H, TN]
    for f in range(1, n_feats):                                        # unrolled
        acc = acc + w1t_ref[:, f:f + 1] * x_ref[pl.ds(f, 1), :]
    h = jnp.tanh(acc)                                                  # EUP

    # Layer 2 (output width 1): broadcast multiply by w2 + sublane reduce over H.
    s = jnp.sum(h * b1w2_ref[:, 1:2], axis=0, keepdims=True)          # [1, TN]
    o_ref[...] = s + b2_ref[0, 0]                                     # SMEM scalar bias


def _choose_tiles(n, tn_max):
    """Pick a lane tile (multiple of 128), grid steps and padded length."""
    n128 = ((n + 127) // 128) * 128
    steps = max(1, -(-n128 // tn_max))
    if n128 >= 256:
        steps = max(steps, 2)         # keep >= 2 grid steps so both v7x TCs get work
    tn = -(-n128 // steps)
    tn = ((tn + 127) // 128) * 128    # lane tile must be a multiple of 128
    steps = -(-n128 // tn)
    n_pad = steps * tn                # tail waste <= steps*128 columns
    return tn, steps, n_pad


def ffcoref_forward(x_fn, w1, b1, w2, b2, *, tn_max=16384):
    """Batched FFCoref forward.

    x_fn: [F, N] feature-major batch (batch on the last/lane axis; produce it in
          this layout upstream so no host-side relayout is needed).
    w1: [F, H]; b1: [1, H]; w2: [H, 1]; b2: [1, 1].
    Returns scores [N, 1] float32.
    """
    F, N = x_fn.shape
    H = w1.shape[1]
    tn, steps, n_pad = _choose_tiles(N, tn_max)

    x_fn = jnp.asarray(x_fn, jnp.float32)
    if n_pad != N:
        # Cheap contiguous tail pad along the lane axis (no relayout/transpose).
        x_fn = jnp.pad(x_fn, ((0, 0), (0, n_pad - N)))

    w1t = jnp.asarray(w1, jnp.float32).T                              # [H, F]
    b1c = jnp.reshape(jnp.asarray(b1, jnp.float32), (H, 1))           # [H, 1]
    w2c = jnp.reshape(jnp.asarray(w2, jnp.float32), (H, 1))           # [H, 1]
    b1w2 = jnp.concatenate([b1c, w2c], axis=1)                        # [H, 2]
    b2s = jnp.reshape(jnp.asarray(b2, jnp.float32), (1, 1))           # [1, 1]

    out = pl.pallas_call(
        _ffcoref_kernel,
        out_shape=jax.ShapeDtypeStruct((1, n_pad), jnp.float32),
        grid=(steps,),
        in_specs=[
            pl.BlockSpec((F, tn), lambda i: (0, i)),     # new batch slice per step
            pl.BlockSpec((H, F), lambda i: (0, 0)),      # weights resident in VMEM
            pl.BlockSpec((H, 2), lambda i: (0, 0)),      # packed b1 | w2
            pl.BlockSpec(memory_space=pltpu.MemorySpace.SMEM),   # b2 scalar
        ],
        out_specs=pl.BlockSpec((1, tn), lambda i: (0, i)),
        compiler_params=pltpu.CompilerParams(
            dimension_semantics=("parallel",),
            vmem_limit_bytes=48 * 1024 * 1024,   # large tiles still compile on v5e
        ),
    )(x_fn, w1t, b1w2, b2s)

    return out[0, :N].reshape(N, 1)


def make_params(key, num_feats, hidden_dim):
    """Deterministic synthetic parameters (shapes match nn.Linear(F,H), nn.Linear(H,1))."""
    k1, k2, k3, k4 = jax.random.split(key, 4)
    # mimic PyTorch's uniform(-1/sqrt(fan_in), 1/sqrt(fan_in)) init scale
    s1 = 1.0 / jnp.sqrt(jnp.float32(num_feats))
    s2 = 1.0 / jnp.sqrt(jnp.float32(hidden_dim))
    w1 = jax.random.uniform(k1, (num_feats, hidden_dim), jnp.float32, -s1, s1)
    b1 = jax.random.uniform(k2, (1, hidden_dim), jnp.float32, -s1, s1)
    w2 = jax.random.uniform(k3, (hidden_dim, 1), jnp.float32, -s2, s2)
    b2 = jax.random.uniform(k4, (1, 1), jnp.float32, -s2, s2)
    return w1, b1, w2, b2


if __name__ == "__main__":
    key = jax.random.PRNGKey(0)
    kx, kp, kx2 = jax.random.split(key, 3)

    # Small shapes consistent with the module: F pairwise-match features, hidden_dim=32.
    N, F, H = 8, 4, 32

    # Synthetic binary pairwise-matching features, produced feature-major [F, N]
    # (the kernel's native layout -> no host-side [N,F]->[F,N] relayout pass).
    x_fn = (jax.random.uniform(kx, (F, N)) > 0.5).astype(jnp.float32)
    w1, b1, w2, b2 = make_params(kp, F, H)

    scores = jax.block_until_ready(ffcoref_forward(x_fn, w1, b1, w2, b2))

    # Pure-JAX reference check of the forward semantics.
    ref = jnp.tanh(x_fn.T @ w1 + b1) @ w2 + b2
    assert scores.shape == (N, 1)
    assert jnp.allclose(scores, ref, atol=1e-4, rtol=1e-4), "mismatch vs reference (small)"

    # Larger batched run: exercises grid >= 2 (both v7x TensorCores get work),
    # resident weights, and minimal tail padding (pad only to steps * tn_128).
    N2 = 4133
    x2 = (jax.random.uniform(kx2, (F, N2)) > 0.5).astype(jnp.float32)
    scores2 = jax.block_until_ready(ffcoref_forward(x2, w1, b1, w2, b2))
    ref2 = jnp.tanh(x2.T @ w1 + b1) @ w2 + b2
    assert scores2.shape == (N2, 1)
    assert jnp.allclose(scores2, ref2, atol=1e-4, rtol=1e-4), "mismatch vs reference (batched)"

    # TODO(synk): score_instance / instance_top_scores involve Python-side feature
    # extraction callbacks and gold-label bookkeeping; only the (now batched)
    # neural forward pass is a kernel-level op and is what is implemented here.
    print("KERNEL_OK")
</pallas_src>

<mosaic_0001>
module attributes {stable_mosaic.version = 11 : i64} {
  func.func @_ffcoref_kernel(%arg0: i32, %arg1: memref<4x128xf32, #tpu.memory_space<vmem>>, %arg2: memref<32x4xf32, #tpu.memory_space<vmem>>, %arg3: memref<32x2xf32, #tpu.memory_space<vmem>>, %arg4: memref<1x1xf32, #tpu.memory_space<smem>>, %arg5: memref<1x128xf32, #tpu.memory_space<vmem>>) attributes {dimension_semantics = [#tpu.dimension_semantics<parallel>], iteration_bounds = array<i64: 1>, scalar_prefetch = 0 : i64, scratch_operands = 0 : i64, tpu.core_type = #tpu.core_type<tc>, window_params = [{transform_indices = @transform_0, window_bounds = array<i64: 4, 128>}, {pipeline_mode = #tpu.pipeline_mode<synchronous>, transform_indices = @transform_1, window_bounds = array<i64: 32, 4>}, {pipeline_mode = #tpu.pipeline_mode<synchronous>, transform_indices = @transform_2, window_bounds = array<i64: 32, 2>}, {transform_indices = @transform_3, window_bounds = array<i64: 1, 1>}, {transform_indices = @transform_4, window_bounds = array<i64: 1, 128>}]} {
    %c0 = arith.constant 0 : index
    %c0_0 = arith.constant 0 : index
    %0 = vector.load %arg3[%c0, %c0_0] : memref<32x2xf32, #tpu.memory_space<vmem>>, vector<32x1xf32>
    %c0_1 = arith.constant 0 : index
    %c0_2 = arith.constant 0 : index
    %1 = vector.load %arg2[%c0_1, %c0_2] : memref<32x4xf32, #tpu.memory_space<vmem>>, vector<32x1xf32>
    %c0_3 = arith.constant 0 : index
    %c0_4 = arith.constant 0 : index
    %2 = vector.load %arg1[%c0_3, %c0_4] : memref<4x128xf32, #tpu.memory_space<vmem>>, vector<1x128xf32>
    %3 = vector.broadcast %1 : vector<32x1xf32> to vector<32x128xf32>
    %4 = vector.broadcast %2 : vector<1x128xf32> to vector<32x128xf32>
    %5 = arith.mulf %3, %4 : vector<32x128xf32>
    %6 = vector.broadcast %0 : vector<32x1xf32> to vector<32x128xf32>
    %7 = arith.addf %6, %5 : vector<32x128xf32>
    %c0_5 = arith.constant 0 : index
    %c1 = arith.constant 1 : index
    %8 = vector.load %arg2[%c0_5, %c1] : memref<32x4xf32, #tpu.memory_space<vmem>>, vector<32x1xf32>
    %c1_6 = arith.constant 1 : index
    %c0_7 = arith.constant 0 : index
    %9 = vector.load %arg1[%c1_6, %c0_7] : memref<4x128xf32, #tpu.memory_space<vmem>>, vector<1x128xf32>
    %10 = vector.broadcast %8 : vector<32x1xf32> to vector<32x128xf32>
    %11 = vector.broadcast %9 : vector<1x128xf32> to vector<32x128xf32>
    %12 = arith.mulf %10, %11 : vector<32x128xf32>
    %13 = arith.addf %7, %12 : vector<32x128xf32>
    %c0_8 = arith.constant 0 : index
    %c2 = arith.constant 2 : index
    %14 = vector.load %arg2[%c0_8, %c2] : memref<32x4xf32, #tpu.memory_space<vmem>>, vector<32x1xf32>
    %c2_9 = arith.constant 2 : index
    %c0_10 = arith.constant 0 : index
    %15 = vector.load %arg1[%c2_9, %c0_10] : memref<4x128xf32, #tpu.memory_space<vmem>>, vector<1x128xf32>
    %16 = vector.broadcast %14 : vector<32x1xf32> to vector<32x128xf32>
    %17 = vector.broadcast %15 : vector<1x128xf32> to vector<32x128xf32>
    %18 = arith.mulf %16, %17 : vector<32x128xf32>
    %19 = arith.addf %13, %18 : vector<32x128xf32>
    %c0_11 = arith.constant 0 : index
    %c3 = arith.constant 3 : index
    %20 = vector.load %arg2[%c0_11, %c3] : memref<32x4xf32, #tpu.memory_space<vmem>>, vector<32x1xf32>
    %c3_12 = arith.constant 3 : index
    %c0_13 = arith.constant 0 : index
    %21 = vector.load %arg1[%c3_12, %c0_13] : memref<4x128xf32, #tpu.memory_space<vmem>>, vector<1x128xf32>
    %22 = vector.broadcast %20 : vector<32x1xf32> to vector<32x128xf32>
    %23 = vector.broadcast %21 : vector<1x128xf32> to vector<32x128xf32>
    %24 = arith.mulf %22, %23 : vector<32x128xf32>
    %25 = arith.addf %19, %24 : vector<32x128xf32>
    %26 = math.tanh %25 : vector<32x128xf32>
    %c0_14 = arith.constant 0 : index
    %c1_15 = arith.constant 1 : index
    %27 = vector.load %arg3[%c0_14, %c1_15] : memref<32x2xf32, #tpu.memory_space<vmem>>, vector<32x1xf32>
    %28 = vector.broadcast %27 : vector<32x1xf32> to vector<32x128xf32>
    %29 = arith.mulf %26, %28 : vector<32x128xf32>
    %cst = arith.constant dense<0.000000e+00> : vector<128xf32>
    %30 = vector.multi_reduction <add>, %29, %cst [0] : vector<32x128xf32> to vector<128xf32>
    %31 = vector.shape_cast %30 : vector<128xf32> to vector<1x128xf32>
    %c0_16 = arith.constant 0 : index
    %c0_17 = arith.constant 0 : index
    %32 = memref.load %arg4[%c0_16, %c0_17] : memref<1x1xf32, #tpu.memory_space<smem>>
    %33 = vector.broadcast %32 : f32 to vector<1x128xf32>
    %34 = arith.addf %31, %33 : vector<1x128xf32>
    %c0_18 = arith.constant 0 : index
    %c0_19 = arith.constant 0 : index
    %35 = vector.load %arg5[%c0_18, %c0_19] : memref<1x128xf32, #tpu.memory_space<vmem>>, vector<1x128xf32>
    tpu.vector_store %arg5[%c0_18, %c0_19], %34 {strides = array<i32>} : memref<1x128xf32, #tpu.memory_space<vmem>>, vector<1x128xf32>,
    return
  }
  func.func @transform_0(%arg0: i32) -> (i32, i32) {
    %c0_i32 = arith.constant 0 : i32
    %c0_i32_0 = arith.constant 0 : i32
    return %c0_i32, %arg0 : i32, i32
  }
  func.func @transform_1(%arg0: i32) -> (i32, i32) {
    %c0_i32 = arith.constant 0 : i32
    %c0_i32_0 = arith.constant 0 : i32
    %c0_i32_1 = arith.constant 0 : i32
    return %c0_i32, %c0_i32_0 : i32, i32
  }
  func.func @transform_2(%arg0: i32) -> (i32, i32) {
    %c0_i32 = arith.constant 0 : i32
    %c0_i32_0 = arith.constant 0 : i32
    %c0_i32_1 = arith.constant 0 : i32
    return %c0_i32, %c0_i32_0 : i32, i32
  }
  func.func @transform_3(%arg0: i32) -> (i32, i32) {
    %c0_i32 = arith.constant 0 : i32
    %c0_i32_0 = arith.constant 0 : i32
    %c0_i32_1 = arith.constant 0 : i32
    return %c0_i32, %c0_i32_0 : i32, i32
  }
  func.func @transform_4(%arg0: i32) -> (i32, i32) {
    %c0_i32 = arith.constant 0 : i32
    %c0_i32_0 = arith.constant 0 : i32
    return %c0_i32, %arg0 : i32, i32
  }
}

</mosaic_0001>

<bundles_post_ra>
// kernel: tpu_custom_call.1
= control target key start
LH: loop header
LB: loop body
LE: loop exit
PB: predicated region body
PF: predicated region fallthrough
CT: control target
= control target key end

     0   :  { %v274_v2 = vmov 0   ;;  %s355_s0 = inlined_call_operand.vmem [shape: f32[4,128], index: 0, kind: input, shape index: {}]   ;;  %s356_s1 = inlined_call_operand.vmem [shape: f32[32,4], index: 1, kind: input, shape index: {}]   ;;  %s357_s2 = inlined_call_operand.vmem [shape: f32[32,2], index: 2, kind: input, shape index: {}]   ;;  %s358_s3 = inlined_call_operand.<no memory space> [shape: f32[1,1], index: 3, kind: input, shape index: {}]   ;;  %s359_s4 = inlined_call_operand.hbm [shape: f32[1,128], index: 4, kind: output, shape index: {}]  }
   0x1   :  { %v25_v0 = vld [vmem:[%s356_s1 + $0x10] sm:$0xff]  ;;  %v23_v1 = vld [vmem:[%s356_s1] sm:$0xff]  ;;  %228 = vset.pattern.permute.xlu1 %v274_v2  ;;  %227 = vset.pattern.permute.xlu0 %v274_v2  ;;  %v24_v3 = vld [vmem:[%s356_s1 + $0x8] sm:$0xff] }
   0x2   :  { %40 = vperm.xlu1 %228, %v25_v0   ;;  %30 = vperm.xlu0 %227, %v23_v1   ;;  %v19_v4 = vld [vmem:[%s357_s2] sm:$0xff] }
   0x3   :  { %10 = vsyncpa [#allocation4], 0  ;;  %v20_v5 = vld [vmem:[%s357_s2 + $0x8] sm:$0xff]  ;;  %v275_v6 = vmov 1   ;;  %v26_v7 = vld [vmem:[%s356_s1 + $0x18] sm:$0xff]  ;;  %v276_v9 = vmov 2  }
   0x4   :  { %v21_v8 = vld [vmem:[%s357_s2 + $0x10] sm:$0xff]  ;;  %v22_v10 = vld [vmem:[%s357_s2 + $0x18] sm:$0xff]  ;;  %v277_v11 = vmov 3   ;;  %v218_v25 = vld [vmem:[%s355_s0] ss:$0 sm:$0xff]  ;;  %s278_s12 = smov [#allocation3]  }
   0x5   :  { %v219_v26 = vld [vmem:[%s355_s0 + $0x1] ss:$0 sm:$0xff]  ;;  %v220_v31 = vld [vmem:[%s355_s0 + $0x2] ss:$0 sm:$0xff]  ;;  %v221_v37 = vld [vmem:[%s355_s0 + $0x3] ss:$0 sm:$0xff] }
   0x6   :  { %35 = vperm.xlu0 %227, %v24_v3   ;;  %58 = vperm.xlu1 %228, %v19_v4   ;;  %s210_s13 = sshll.u32 %s278_s12, 4  ;;  %s211_s13 = int_to_ptr.vmem [resolvable:$true] %s210_s13 }
   0x7   :  { %s250_s14 = scalar_lea.vmem %s211_s13, 16  ;;  %s254_s15 = scalar_lea.vmem %s211_s13, 32 }
   0x8   :  { %p251_p0 = scmp.ne.s32.totalorder %s211_s13, %s250_s14  ;;  %p255_p1 = scmp.lt.s32.totalorder %s211_s13, %s211_s13 }
   0x9   :  { %p256_p2 = scmp.lt.s32.totalorder %s254_s15, %s250_s14 }
   0xa   :  { %63 = vperm.xlu0 %227, %v20_v5   ;;  %229 = vset.pattern.permute.xlu1 %v275_v6 }
   0xb   :  { %82 = vperm.xlu1 %229, %v23_v1   ;;  %p257_p3 = por %p256_p2, %p255_p1 }
   0xd   :  { %p258_p4 = pnand %p257_p3, %p251_p0 }
   0xe   :  { %230 = vset.pattern.permute.xlu0 %v275_v6 }
   0xf   :  { %86 = vperm.xlu0 %230, %v24_v3   ;;  %231 = vset.pattern.permute.xlu1 %v274_v2 }
  0x10   :  { %45 = vperm.xlu1 %231, %v26_v7  }
  0x13   :  { %90 = vperm.xlu0 %230, %v25_v0  }
  0x14   :  { %68 = vperm.xlu1 %231, %v21_v8  }
  0x17   :  { %233 = vset.pattern.permute.xlu0 %v276_v9 }
  0x18   :  { %115 = vperm.xlu0 %233, %v24_v3   ;;  %232 = vset.pattern.permute.xlu1 %v276_v9 }
  0x19   :  { %111 = vperm.xlu1 %232, %v23_v1  }
  0x1c   :  { %119 = vperm.xlu0 %233, %v25_v0  }
  0x1d   :  { %234 = vset.pattern.permute.xlu1 %v274_v2 }
  0x1e   :  { %73 = vperm.xlu1 %234, %v22_v10  }
  0x20   :  { %237 = vset.pattern.permute.xlu0 %v277_v11 }
  0x21   :  { %144 = vperm.xlu0 %237, %v24_v3  }
  0x22   :  { %235 = vset.pattern.permute.xlu1 %v275_v6 }
  0x23   :  { %94 = vperm.xlu1 %235, %v26_v7  }
  0x25   :  { %152 = vperm.xlu0 %237, %v26_v7  }
  0x27   :  { %236 = vset.pattern.permute.xlu1 %v277_v11 }
  0x28   :  { %140 = vperm.xlu1 %236, %v23_v1  }
  0x29   :  { %241 = vset.pattern.permute.xlu0 %v275_v6 }
  0x2a   :  { %176 = vperm.xlu0 %241, %v20_v5  }
  0x2c   :  { %238 = vset.pattern.permute.xlu1 %v276_v9 }
  0x2d   :  { %123 = vperm.xlu1 %238, %v26_v7  }
  0x31   :  { %239 = vset.pattern.permute.xlu1 %v277_v11 }
  0x32   :  { %148 = vperm.xlu1 %239, %v25_v0  }
  0x36   :  { %240 = vset.pattern.permute.xlu1 %v275_v6 }
  0x37   :  { %172 = vperm.xlu1 %240, %v19_v4  }
  0x3b   :  { %180 = vperm.xlu1 %240, %v21_v8  }
  0x3f   :  { %184 = vperm.xlu1 %240, %v22_v10  }
  0x81   :  { %v41_v12 = vpop.permute.xlu1 %40  ;;  %v31_v13 = vpop.permute.xlu0 %30 }
  0x82   :  { %v52_v28 = vmul.f32 %v218_v25, %v31_v13  ;;  %v54_v45 = vmul.f32 %v218_v25, %v41_v12 }
  0x85   :  { %v59_v14 = vpop.permute.xlu1 %58  ;;  %v36_v15 = vpop.permute.xlu0 %35 }
  0x86   :  { %v53_v29 = vmul.f32 %v218_v25, %v36_v15  ;;  %v76_v33 = vadd.f32 %v59_v14, %v52_v28 }
  0x89   :  { %v64_v16 = vpop.permute.xlu0 %63 }
  0x8a   :  { %v83_v17 = vpop.permute.xlu1 %82  ;;  %v77_v34 = vadd.f32 %v64_v16, %v53_v29 }
  0x8b   :  { %v101_v32 = vmul.f32 %v219_v26, %v83_v17 }
  0x8d   :  { %v105_v40 = vadd.f32 %v101_v32, %v76_v33 }
  0x8e   :  { %v87_v18 = vpop.permute.xlu0 %86 }
  0x8f   :  { %v46_v19 = vpop.permute.xlu1 %45  ;;  %v102_v35 = vmul.f32 %v219_v26, %v87_v18 }
  0x90   :  { %v55_v43 = vmul.f32 %v218_v25, %v46_v19 }
  0x91   :  { %v106_v46 = vadd.f32 %v102_v35, %v77_v34 }
  0x92   :  { %v91_v21 = vpop.permute.xlu0 %90 }
  0x93   :  { %v69_v20 = vpop.permute.xlu1 %68  ;;  %v103_v50 = vmul.f32 %v219_v26, %v91_v21 }
  0x94   :  { %v78_v51 = vadd.f32 %v69_v20, %v54_v45 }
  0x96   :  { %v107_v62 = vadd.f32 %v103_v50, %v78_v51 }
  0x97   :  { %v116_v23 = vpop.permute.xlu0 %115 }
  0x98   :  { %v112_v22 = vpop.permute.xlu1 %111  ;;  %v131_v41 = vmul.f32 %v220_v31, %v116_v23 }
  0x99   :  { %v130_v36 = vmul.f32 %v220_v31, %v112_v22 }
  0x9a   :  { %v135_v52 = vadd.f32 %v131_v41, %v106_v46 }
  0x9b   :  { %v120_v27 = vpop.permute.xlu0 %119  ;;  %v134_v47 = vadd.f32 %v130_v36, %v105_v40 }
  0x9c   :  { %v132_v59 = vmul.f32 %v220_v31, %v120_v27 }
  0x9d   :  { %v74_v24 = vpop.permute.xlu1 %73 }
  0x9e   :  { %v79_v49 = vadd.f32 %v74_v24, %v55_v43  ;;  %v136_v1 = vadd.f32 %v132_v59, %v107_v62  ;;  %v201_v24 = vstv %s358_s3 }
  0xa0   :  { %v145_v38 = vpop.permute.xlu0 %144 }
  0xa1   :  { %v160_v48 = vmul.f32 %v221_v37, %v145_v38 }
  0xa2   :  { %v95_v30 = vpop.permute.xlu1 %94 }
  0xa3   :  { %v104_v44 = vmul.f32 %v219_v26, %v95_v30  ;;  %v164_v60 = vadd.f32 %v160_v48, %v135_v52 }
  0xa4   :  { %v153_v54 = vpop.permute.xlu0 %152 }
  0xa5   :  { %v108_v56 = vadd.f32 %v104_v44, %v79_v49  ;;  %v162_v57 = vmul.f32 %v221_v37, %v153_v54 }
  0xa7   :  { %v141_v39 = vpop.permute.xlu1 %140 }
  0xa8   :  { %v159_v42 = vmul.f32 %v221_v37, %v141_v39 }
  0xa9   :  { %v177_v8 = vpop.permute.xlu0 %176 }
  0xaa   :  { %v163_v53 = vadd.f32 %v159_v42, %v134_v47 }
  0xac   :  { %v124_v55 = vpop.permute.xlu1 %123  ;;  %242 = vtanh.f32 %v163_v53 }
  0xad   :  { %v133_v58 = vmul.f32 %v220_v31, %v124_v55  ;;  %244 = vtanh.f32 %v164_v60 }
  0xaf   :  { %v137_v61 = vadd.f32 %v133_v58, %v108_v56 }
  0xb1   :  { %v166_v63 = vadd.f32 %v162_v57, %v137_v61  ;;  %v149_v0 = vpop.permute.xlu1 %148 }
  0xb2   :  { %v161_v2 = vmul.f32 %v221_v37, %v149_v0 }
  0xb3   :  { %246 = vtanh.f32 %v166_v63 }
  0xb4   :  { %v165_v3 = vadd.f32 %v161_v2, %v136_v1 }
  0xb6   :  { %248 = vtanh.f32 %v165_v3  ;;  %v173_v4 = vpop.permute.xlu1 %172  ;;  %v243_v5 = vpop.eup %242 }
  0xb7   :  { %v245_v7 = vpop.eup %244  ;;  %v187_v9 = vmul.f32 %v243_v5, %v173_v4 }
  0xb8   :  { %v188_v11 = vmul.f32 %v245_v7, %v177_v8 }
  0xba   :  { %v181_v6 = vpop.permute.xlu1 %180  ;;  %v191_v14 = vadd.f32 %v188_v11, %v187_v9 }
  0xbd   :  { %v247_v10 = vpop.eup %246 }
  0xbe   :  { %v185_v13 = vpop.permute.xlu1 %184 }
  0xbf   :  { %v190_v17 = vmul.f32 %v247_v10, %v185_v13 }
  0xc0   :  { %v249_v12 = vpop.eup %248 }
  0xc1   :  { %v189_v15 = vmul.f32 %v249_v12, %v181_v6 }
  0xc3   :  { %v192_v16 = vadd.f32 %v191_v14, %v189_v15 }
  0xc5   :  { %v193_v18 = vadd.f32 %v192_v16, %v190_v17 }
  0xc7   :  { %v194_v19 = vrot.slane %v193_v18, 4 }
  0xc9   :  { %v195_v20 = vadd.f32 %v194_v19, %v193_v18 }
  0xcb   :  { %v196_v21 = vrot.slane %v195_v20, 2 }
  0xcd   :  { %v197_v22 = vadd.f32 %v196_v21, %v195_v20 }
  0xcf   :  { %v198_v23 = vrot.slane %v197_v22, 1 }
  0xd1   :  { %v199_v25 = vadd.f32 %v198_v23, %v197_v22 }
  0xd3   :  { %v202_v26 = vadd.f32 %v201_v24, %v199_v25 }
  0xd5   :  { %203 = vst [vmem:[#allocation3] sm:$0x1] %v202_v26 }
  0xd6   :  { %261 = shalt.err (!%p258_p4)
}
  0xd7   :  { %s262_s18 = scalar_lea.hbm %s359_s4, 16 }
  0xd8   :  { %p263_p5 = scmp.ne.s32.totalorder %s359_s4, %s262_s18  ;;  %p266_p6 = scmp.lt.u32.totalorder %s262_s18, %s359_s4 }
  0xda   :  { %p268_p7 = pnand %p266_p6, %p263_p5 }
  0xdc   :  { %271 = shalt.err (!%p268_p7)
}
  0xdd   :  { %213 = dma.vmem_to_hbm [thread:$0]  %s211_s13, 16, %s359_s4, [#allocation4]  }
  0xde   :  { %272 = dma.done.wait [#allocation4], 16  }
  0xdf   :  { %273 = vsyncadd [#allocation4], 4294967280 }
  0xe0   :  { %217 = vsyncpa [#allocation4], 1 }

</bundles_post_ra>
